<compile_context>
chip_gen: v7x
topology: tpu7x:2x2x1
jax: 0.10.0
libtpu: 0.0.40
codegen_flags: <defaults>
</compile_context>

<pallas_src>
import math

import jax
import jax.numpy as jnp
from jax.experimental import pallas as pl
from jax.experimental.pallas import tpu as pltpu

_SHIFT = math.log(2.0)
_SOFTPLUS_THRESHOLD = 20.0  # match torch.nn.Softplus default threshold

_LANE_WIDTH = 1024                     # lanes per tile (multiple of 128)
_TARGET_TILE_BYTES = 2 * 1024 * 1024   # ~2 MiB per buffer


def _ssp_kernel(x_ref, o_ref):
    x = x_ref[...]
    # Native bf16 compute on chips with bf16 VPU/EUP; upcast everything else.
    if x.dtype in (jnp.float32, jnp.bfloat16):
        xc = x
    else:
        xc = x.astype(jnp.float32)
    thr = jnp.asarray(_SOFTPLUS_THRESHOLD, xc.dtype)
    # PyTorch Softplus: x if x > threshold else log1p(exp(x)).
    # Clamp the exp argument so the unselected branch never overflows.
    sp = jnp.where(xc > thr, xc, jnp.log1p(jnp.exp(jnp.minimum(xc, thr))))
    o_ref[...] = (sp - jnp.asarray(_SHIFT, xc.dtype)).astype(o_ref.dtype)


def shifted_softplus(x: jax.Array) -> jax.Array:
    """ShiftedSoftplus over an arbitrary-shaped array (elementwise)."""
    orig_shape = x.shape
    dtype = x.dtype
    total = x.size
    if total == 0:
        return x

    C = _LANE_WIDTH
    itemsize = jnp.dtype(dtype).itemsize

    # Flatten to a lane-dense slab: (rows, C), rows padded to a tile multiple.
    rows = -(-total // C)                                  # ceil(total / C)
    max_rows = max(8, (_TARGET_TILE_BYTES // (C * itemsize)) // 8 * 8)
    br = min(rows, max_rows)                               # row tile
    grid_rows = -(-rows // br)
    rows_padded = grid_rows * br
    pad_elems = rows_padded * C - total

    flat = x.reshape(-1)
    if pad_elems:
        flat = jnp.pad(flat, (0, pad_elems))
    x2 = flat.reshape(rows_padded, C)

    out2 = pl.pallas_call(
        _ssp_kernel,
        out_shape=jax.ShapeDtypeStruct((rows_padded, C), dtype),
        grid_spec=pltpu.PrefetchScalarGridSpec(
            num_scalar_prefetch=0,
            grid=(grid_rows,),
            in_specs=[pl.BlockSpec((br, C), lambda i: (i, 0))],
            out_specs=pl.BlockSpec((br, C), lambda i: (i, 0)),
        ),
        compiler_params=pltpu.CompilerParams(
            dimension_semantics=("parallel",),
        ),
    )(x2)

    out_flat = out2.reshape(-1)
    if pad_elems:
        out_flat = out_flat[:total]
    return out_flat.reshape(orig_shape)


def _reference(x):
    xf = x.astype(jnp.float32)
    sp = jnp.where(xf > _SOFTPLUS_THRESHOLD, xf, jnp.log1p(jnp.exp(xf)))
    return (sp - _SHIFT).astype(x.dtype)


if __name__ == "__main__":
    key = jax.random.PRNGKey(0)
    k1, k2 = jax.random.split(key)

    # SchNet-style feature tensor: (nodes, hidden)
    x1 = jax.random.normal(k1, (128, 256), dtype=jnp.float32) * 5.0
    y1 = shifted_softplus(x1)
    jax.block_until_ready(y1)
    assert jnp.allclose(y1, _reference(x1), atol=1e-5, rtol=1e-5), "mismatch (128,256)"

    # Awkward shape: non-128-aligned last dim + padding path exercised.
    x2 = jax.random.normal(k2, (7, 3, 50), dtype=jnp.float32) * 5.0
    y2 = shifted_softplus(x2)
    jax.block_until_ready(y2)
    assert y2.shape == x2.shape
    assert jnp.allclose(y2, _reference(x2), atol=1e-5, rtol=1e-5), "mismatch (7,3,50)"

    print("KERNEL_OK")
</pallas_src>

<mosaic_0001>
module attributes {stable_mosaic.version = 11 : i64} {
  func.func @_ssp_kernel(%arg0: i32, %arg1: memref<32x1024xf32, #tpu.memory_space<vmem>>, %arg2: memref<32x1024xf32, #tpu.memory_space<vmem>>) attributes {dimension_semantics = [#tpu.dimension_semantics<parallel>], iteration_bounds = array<i64: 1>, scalar_prefetch = 0 : i64, scratch_operands = 0 : i64, tpu.core_type = #tpu.core_type<tc>, window_params = [{transform_indices = @transform_0, window_bounds = array<i64: 32, 1024>}, {transform_indices = @transform_1, window_bounds = array<i64: 32, 1024>}]} {
    %c0 = arith.constant 0 : index
    %c0_0 = arith.constant 0 : index
    %0 = vector.load %arg1[%c0, %c0_0] : memref<32x1024xf32, #tpu.memory_space<vmem>>, vector<32x1024xf32>
    %cst = arith.constant 2.000000e+01 : f32
    %1 = vector.broadcast %cst : f32 to vector<32x1024xf32>
    %2 = arith.cmpf ogt, %0, %1 : vector<32x1024xf32>
    %cst_1 = arith.constant 2.000000e+01 : f32
    %3 = vector.broadcast %cst_1 : f32 to vector<32x1024xf32>
    %4 = arith.minimumf %0, %3 : vector<32x1024xf32>
    %5 = math.exp %4 : vector<32x1024xf32>
    %6 = math.log1p %5 : vector<32x1024xf32>
    %7 = arith.select %2, %0, %6 : vector<32x1024xi1>, vector<32x1024xf32>
    %cst_2 = arith.constant 0.693147182 : f32
    %8 = vector.broadcast %cst_2 : f32 to vector<32x1024xf32>
    %9 = arith.subf %7, %8 : vector<32x1024xf32>
    %c0_3 = arith.constant 0 : index
    %c0_4 = arith.constant 0 : index
    %10 = vector.load %arg2[%c0_3, %c0_4] : memref<32x1024xf32, #tpu.memory_space<vmem>>, vector<32x1024xf32>
    tpu.vector_store %arg2[%c0_3, %c0_4], %9 {strides = array<i32>} : memref<32x1024xf32, #tpu.memory_space<vmem>>, vector<32x1024xf32>,
    return
  }
  func.func @transform_0(%arg0: i32) -> (i32, i32) {
    %c0_i32 = arith.constant 0 : i32
    %c0_i32_0 = arith.constant 0 : i32
    return %arg0, %c0_i32 : i32, i32
  }
  func.func @transform_1(%arg0: i32) -> (i32, i32) {
    %c0_i32 = arith.constant 0 : i32
    %c0_i32_0 = arith.constant 0 : i32
    return %arg0, %c0_i32 : i32, i32
  }
}

</mosaic_0001>

<bundles_post_ra>
// kernel: tpu_custom_call.1
= control target key start
LH: loop header
LB: loop body
LE: loop exit
PB: predicated region body
PF: predicated region fallthrough
CT: control target
= control target key end

     0   :  { %6 = vsyncpa [#allocation3], 0  ;;  %s1334_s0 = inlined_call_operand.hbm [shape: f32[32,1024], index: 0, kind: input, shape index: {}]   ;;  %s1335_s1 = inlined_call_operand.hbm [shape: f32[32,1024], index: 1, kind: output, shape index: {}]  }
   0x1   :  { %7 = vsyncpa [#allocation4], 0  ;;  %s796_s6 = smov [#allocation2]   ;;  %s748_s10 = scalar_lea.hbm %s1334_s0, 4096 }
   0x2   :  { %s13_s7 = sshll.u32 %s796_s6, 4  ;;  %p749_p0 = scmp.ne.s32.totalorder %s1334_s0, %s748_s10  ;;  %s14_s7 = int_to_ptr.vmem [resolvable:$true] %s13_s7 }
   0x3   :  { %p752_p1 = scmp.lt.u32.totalorder %s748_s10, %s1334_s0 }
   0x5   :  { %p754_p2 = pnand %p752_p1, %p749_p0 }
   0x7   :  { %757 = shalt.err (!%p754_p2)
}
   0x8   :  { %s758_s15 = scalar_lea.vmem %s14_s7, 4096  ;;  %p763_p4 = scmp.lt.s32.totalorder %s14_s7, %s14_s7 }
   0x9   :  { %p759_p3 = scmp.ne.s32.totalorder %s14_s7, %s758_s15  ;;  %p764_p5 = scmp.lt.s32.totalorder %s758_s15, %s758_s15 }
   0xb   :  { %p765_p6 = por %p764_p5, %p763_p4 }
   0xd   :  { %p766_p7 = pnand %p765_p6, %p759_p3 }
   0xf   :  { %769 = shalt.err (!%p766_p7)
}
  0x10   :  { %s797_s16 = smov 1024   ;;  %s798_s17 = smov 64  }
  0x11   :  { %19 = dma.hbm_to_vmem [thread:$0]  %s1334_s0, 4096, %s14_s7, [#allocation3], %s797_s16, %s797_s16, %s798_s17  }
  0x12   :  { %792 = dma.done.wait [#allocation3], 4096  }
  0x13   :  { %793 = vsyncadd [#allocation3], 4294963200  ;;  %v825_v0 = vld [vmem:[#allocation2] sm:$0xff]  ;;  %v827_v1 = vld [vmem:[#allocation2 + $0x8] sm:$0xff]  ;;  %s799_s0 = smov [#allocation5]  }
  0x14   :  { %v829_v2 = vld [vmem:[#allocation2 + $0x10] sm:$0xff]  ;;  %v87_v3 = vmin.f32 %v825_v0, 20.0  ;;  %v88_v4 = vmin.f32 %v827_v1, 20.0  ;;  %v833_v5 = vld [vmem:[#allocation2 + $0x18] sm:$0xff]  ;;  %v835_v6 = vld [vmem:[#allocation2 + $0x20] sm:$0xff]  ;;  %vm55_vm1 = vcmp.gt.f32.partialorder %v825_v0, 20.0 }
  0x15   :  { %v89_v7 = vmin.f32 %v829_v2, 20.0  ;;  %v90_v8 = vmin.f32 %v833_v5, 20.0  ;;  %v839_v9 = vld [vmem:[#allocation2 + $0x28] sm:$0xff]  ;;  %v841_v10 = vld [vmem:[#allocation2 + $0x30] sm:$0xff]  ;;  %v91_v13 = vmin.f32 %v835_v6, 20.0  ;;  %v846_v19 = vld [vmem:[#allocation2 + $0x38] sm:$0xff] }
  0x16   :  { %v119_v11 = vmul.f32 1.442695, %v87_v3  ;;  %v121_v12 = vmul.f32 1.442695, %v88_v4  ;;  %v92_v16 = vmin.f32 %v839_v9, 20.0  ;;  %v93_v18 = vmin.f32 %v841_v10, 20.0 }
  0x17   :  { %v123_v14 = vmul.f32 1.442695, %v89_v7  ;;  %v125_v15 = vmul.f32 1.442695, %v90_v8  ;;  %v127_v17 = vmul.f32 1.442695, %v91_v13 }
  0x18   :  { %620 = vpow2.f32 %v119_v11  ;;  %v848_v20 = vld [vmem:[#allocation2 + $0x40] sm:$0xff]  ;;  %v129_v21 = vmul.f32 1.442695, %v92_v16  ;;  %v94_v22 = vmin.f32 %v846_v19, 20.0  ;;  %v851_v23 = vld [vmem:[#allocation2 + $0x48] sm:$0xff]  ;;  %v853_v24 = vld [vmem:[#allocation2 + $0x50] sm:$0xff] }
  0x19   :  { %622 = vpow2.f32 %v121_v12  ;;  %v131_v25 = vmul.f32 1.442695, %v93_v18  ;;  %v95_v26 = vmin.f32 %v848_v20, 20.0  ;;  %v856_v27 = vld [vmem:[#allocation2 + $0x58] sm:$0xff]  ;;  %v96_v29 = vmin.f32 %v851_v23, 20.0  ;;  %v859_v30 = vld [vmem:[#allocation2 + $0x60] sm:$0xff] }
  0x1a   :  { %624 = vpow2.f32 %v123_v14  ;;  %v133_v28 = vmul.f32 1.442695, %v94_v22  ;;  %v97_v32 = vmin.f32 %v853_v24, 20.0  ;;  %v98_v34 = vmin.f32 %v856_v27, 20.0  ;;  %v864_v38 = vld [vmem:[#allocation2 + $0x68] sm:$0xff]  ;;  %v867_v42 = vld [vmem:[#allocation2 + $0x70] sm:$0xff] }
  0x1b   :  { %626 = vpow2.f32 %v125_v15  ;;  %v135_v31 = vmul.f32 1.442695, %v95_v26  ;;  %v137_v33 = vmul.f32 1.442695, %v96_v29  ;;  %v99_v36 = vmin.f32 %v859_v30, 20.0  ;;  %v869_v51 = vld [vmem:[#allocation2 + $0x78] sm:$0xff] }
  0x1c   :  { %628 = vpow2.f32 %v127_v17  ;;  %v139_v35 = vmul.f32 1.442695, %v97_v32  ;;  %v141_v37 = vmul.f32 1.442695, %v98_v34  ;;  %v100_v41 = vmin.f32 %v864_v38, 20.0  ;;  %s572_s20 = sshll.u32 %s799_s0, 4  ;;  %s573_s20 = int_to_ptr.vmem [resolvable:$true] %s572_s20 }
  0x1d   :  { %630 = vpow2.f32 %v129_v21  ;;  %v143_v39 = vmul.f32 1.442695, %v99_v36  ;;  %v101_v54 = vmin.f32 %v867_v42, 20.0  ;;  %v102_v62 = vmin.f32 %v869_v51, 20.0  ;;  %s770_s21 = scalar_lea.vmem %s573_s20, 4096  ;;  %p775_p9 = scmp.lt.s32.totalorder %s573_s20, %s573_s20 }
  0x1e   :  { %632 = vpow2.f32 %v131_v25  ;;  %v872_v58 = vmul.f32 1.442695, %v100_v41  ;;  %vm56_vm3 = vcmp.gt.f32.partialorder %v827_v1, 20.0  ;;  %vm57_vm4 = vcmp.gt.f32.partialorder %v829_v2, 20.0  ;;  %p771_p8 = scmp.ne.s32.totalorder %s573_s20, %s770_s21  ;;  %p776_p10 = scmp.lt.s32.totalorder %s770_s21, %s770_s21 }
  0x1f   :  { %634 = vpow2.f32 %v133_v28  ;;  %vm58_vm6 = vcmp.gt.f32.partialorder %v833_v5, 20.0  ;;  %vm59_vm8 = vcmp.gt.f32.partialorder %v835_v6, 20.0  ;;  %vm60_vm10 = vcmp.gt.f32.partialorder %v839_v9, 20.0 }
  0x20   :  { %636 = vpow2.f32 %v135_v31  ;;  %vm61_vm12 = vcmp.gt.f32.partialorder %v841_v10, 20.0  ;;  %vm62_vm14 = vcmp.gt.f32.partialorder %v846_v19, 20.0  ;;  %vm63_vm15 = vcmp.gt.f32.partialorder %v848_v20, 20.0  ;;  %p777_p11 = por %p776_p10, %p775_p9 }
  0x21   :  { %638 = vpow2.f32 %v137_v33 }
  0x22   :  { %v621_v40 = vpop.eup %620  ;;  %640 = vpow2.f32 %v139_v35  ;;  %p778_p12 = pnand %p777_p11, %p771_p8 }
  0x23   :  { %v623_v43 = vpop.eup %622  ;;  %v183_v44 = vadd.f32 1.0, %v621_v40  ;;  %v186_v45 = vmul.f32 -0.5, %v621_v40  ;;  %v189_v46 = vand.u32 2147483647, %v621_v40  ;;  %642 = vpow2.f32 %v141_v37 }
  0x24   :  { %v625_v47 = vpop.eup %624  ;;  %v192_v48 = vadd.f32 1.0, %v623_v43  ;;  %v195_v49 = vmul.f32 -0.5, %v623_v43  ;;  %v198_v50 = vand.u32 2147483647, %v623_v43  ;;  %644 = vpow2.f32 %v143_v39 }
  0x25   :  { %v627_v52 = vpop.eup %626  ;;  %646 = vlog2.f32 %v183_v44  ;;  %v201_v53 = vadd.f32 1.0, %v625_v47  ;;  %v187_v56 = vadd.f32 1.0, %v186_v45  ;;  %v204_v57 = vmul.f32 -0.5, %v625_v47 }
  0x26   :  { %v629_v55 = vpop.eup %628  ;;  %648 = vlog2.f32 %v192_v48  ;;  %vm874_vm0 = vcmp.lt.f32.partialorder %v189_v46, 0.0004427343  ;;  %v210_v61 = vadd.f32 1.0, %v627_v52  ;;  %v196_v3 = vadd.f32 1.0, %v195_v49 }
  0x27   :  { %v631_v59 = vpop.eup %630  ;;  %650 = vlog2.f32 %v201_v53  ;;  %vm882_vm2 = vcmp.lt.f32.partialorder %v198_v50, 0.0004427343  ;;  %v207_v7 = vand.u32 2147483647, %v625_v47  ;;  %v213_v8 = vmul.f32 -0.5, %v627_v52 }
  0x28   :  { %v879_v63 = vpop.eup %632  ;;  %v205_v12 = vadd.f32 1.0, %v204_v57  ;;  %652 = vlog2.f32 %v210_v61  ;;  %v219_v13 = vadd.f32 1.0, %v629_v55  ;;  %v222_v14 = vmul.f32 -0.5, %v629_v55 }
  0x29   :  { %v886_v11 = vpop.eup %634  ;;  %v188_v16 = vmul.f32 %v621_v40, %v187_v56  ;;  %v214_v17 = vadd.f32 1.0, %v213_v8  ;;  %v216_v18 = vand.u32 2147483647, %v627_v52  ;;  %v225_v21 = vand.u32 2147483647, %v629_v55 }
  0x2a   :  { %v889_v15 = vpop.eup %636  ;;  %654 = vlog2.f32 %v219_v13  ;;  %v223_v25 = vadd.f32 1.0, %v222_v14  ;;  %v228_v26 = vadd.f32 1.0, %v631_v59  ;;  %v231_v28 = vmul.f32 -0.5, %v631_v59 }
  0x2b   :  { %v892_v22 = vpop.eup %638  ;;  %v197_v31 = vmul.f32 %v623_v43, %v196_v3  ;;  %vm896_vm5 = vcmp.lt.f32.partialorder %v207_v7, 0.0004427343  ;;  %v234_v33 = vand.u32 2147483647, %v631_v59  ;;  %v237_v34 = vadd.f32 1.0, %v879_v63 }
  0x2c   :  { %v894_v29 = vpop.eup %640  ;;  %v206_v36 = vmul.f32 %v625_v47, %v205_v12  ;;  %656 = vlog2.f32 %v228_v26  ;;  %v232_v37 = vadd.f32 1.0, %v231_v28  ;;  %v240_v39 = vmul.f32 -0.5, %v879_v63 }
  0x2d   :  { %v902_v35 = vpop.eup %642  ;;  %v215_v41 = vmul.f32 %v627_v52, %v214_v17  ;;  %vm907_vm7 = vcmp.lt.f32.partialorder %v216_v18, 0.0004427343  ;;  %658 = vlog2.f32 %v237_v34  ;;  %v246_v44 = vadd.f32 1.0, %v886_v11 }
  0x2e   :  { %v905_v40 = vpop.eup %644  ;;  %v224_v46 = vmul.f32 %v629_v55, %v223_v25  ;;  %vm913_vm9 = vcmp.lt.f32.partialorder %v225_v21, 0.0004427343  ;;  %v241_v48 = vadd.f32 1.0, %v240_v39  ;;  %v243_v49 = vand.u32 2147483647, %v879_v63 }
  0x2f   :  { %v647_v45 = vpop.eup %646  ;;  %vm919_vm11 = vcmp.lt.f32.partialorder %v234_v33, 0.0004427343  ;;  %660 = vlog2.f32 %v246_v44  ;;  %v255_v56 = vadd.f32 1.0, %v889_v15  ;;  %v233_v61 = vmul.f32 %v631_v59, %v232_v37 }
  0x30   :  { %v649_v50 = vpop.eup %648  ;;  %v185_v52 = vmul.f32 0.6931472, %v647_v45  ;;  %v249_v3 = vmul.f32 -0.5, %v886_v11  ;;  %v252_v7 = vand.u32 2147483647, %v886_v11  ;;  %v258_v13 = vmul.f32 -0.5, %v889_v15 }
  0x31   :  { %v651_v57 = vpop.eup %650  ;;  %v194_v55 = vmul.f32 0.6931472, %v649_v50  ;;  %662 = vlog2.f32 %v255_v56  ;;  %v242_v18 = vmul.f32 %v879_v63, %v241_v48  ;;  %vm936_vm13 = vcmp.lt.f32.partialorder %v243_v49, 0.0004427343 }
  0x32   :  { %v191_v8 = vsel %vm874_vm0, %v188_v16, %v185_v52  ;;  %v203_v12 = vmul.f32 0.6931472, %v651_v57  ;;  %v653_v14 = vpop.eup %652  ;;  %v250_v28 = vadd.f32 1.0, %v249_v3  ;;  %v264_v32 = vadd.f32 1.0, %v892_v22 }
  0x33   :  { %v471_v17 = vsel %vm55_vm1, %v825_v0, %v191_v8  ;;  %v200_v59 = vsel %vm882_vm2, %v197_v31, %v194_v55  ;;  %v212_v0 = vmul.f32 0.6931472, %v653_v14  ;;  %v259_v31 = vadd.f32 1.0, %v258_v13 }
  0x34   :  { %v584_v60 = vadd.f32 -0.6931472, %v471_v17  ;;  %v472_v16 = vsel %vm56_vm3, %v827_v1, %v200_v59  ;;  %v209_v25 = vsel %vm896_vm5, %v206_v36, %v203_v12  ;;  %v655_v26 = vpop.eup %654  ;;  %vm956_vm0 = vcmp.lt.f32.partialorder %v252_v7, 0.0004427343  ;;  %v1056_v12 = vld [vmem:[#allocation2 + $0xb0] sm:$0xff] }
  0x35   :  { %v585_v4 = vadd.f32 -0.6931472, %v472_v16  ;;  %v473_v63 = vsel %vm57_vm4, %v829_v2, %v209_v25  ;;  %v218_v34 = vsel %vm907_vm7, %v215_v41, %v212_v0  ;;  %v221_v1 = vmul.f32 0.6931472, %v655_v26 }
  0x36   :  { %535 = vst [vmem:[#allocation5] sm:$0xff] %v584_v60  ;;  %v586_v33 = vadd.f32 -0.6931472, %v473_v63  ;;  %v657_v36 = vpop.eup %656  ;;  %v474_v37 = vsel %vm58_vm6, %v833_v5, %v218_v34  ;;  %v261_v39 = vand.u32 2147483647, %v889_v15  ;;  %v267_v44 = vmul.f32 -0.5, %v892_v22 }
  0x37   :  { %536 = vst [vmem:[#allocation5 + $0x8] sm:$0xff] %v585_v4  ;;  %v659_v45 = vpop.eup %658  ;;  %v587_v41 = vadd.f32 -0.6931472, %v474_v37  ;;  %v227_v43 = vsel %vm913_vm9, %v224_v46, %v221_v1  ;;  %v230_v48 = vmul.f32 0.6931472, %v657_v36  ;;  %664 = vlog2.f32 %v264_v32 }
  0x38   :  { %537 = vst [vmem:[#allocation5 + $0x10] sm:$0xff] %v586_v33  ;;  %v475_v5 = vsel %vm59_vm8, %v835_v6, %v227_v43  ;;  %v239_v49 = vmul.f32 0.6931472, %v659_v45  ;;  %v251_v50 = vmul.f32 %v886_v11, %v250_v28  ;;  %v260_v52 = vmul.f32 %v889_v15, %v259_v31  ;;  %v979_v15 = vld [vmem:[#allocation2 + $0x80] sm:$0xff] }
  0x39   :  { %v661_v56 = vpop.eup %660  ;;  %538 = vst [vmem:[#allocation5 + $0x18] sm:$0xff] %v587_v41  ;;  %v588_v57 = vadd.f32 -0.6931472, %v475_v5  ;;  %v236_v55 = vsel %vm919_vm11, %v233_v61, %v230_v48  ;;  %v268_v3 = vadd.f32 1.0, %v267_v44  ;;  %v273_v46 = vadd.f32 1.0, %v894_v29  ;;  %v1036_v41 = vld [vmem:[#allocation2 + $0xa0] sm:$0xff] }
  0x3a   :  { %v476_v47 = vsel %vm60_vm10, %v839_v9, %v236_v55  ;;  %v245_v6 = vsel %vm936_vm13, %v242_v18, %v239_v49  ;;  %v248_v7 = vmul.f32 0.6931472, %v661_v56  ;;  %vm64_vm1 = vcmp.gt.f32.partialorder %v851_v23, 20.0 }
  0x3b   :  { %v276_v11 = vmul.f32 -0.5, %v894_v29  ;;  %v663_v8 = vpop.eup %662  ;;  %539 = vst [vmem:[#allocation5 + $0x20] sm:$0xff] %v588_v57  ;;  %v589_v53 = vadd.f32 -0.6931472, %v476_v47  ;;  %v477_v61 = vsel %vm61_vm12, %v841_v10, %v245_v6  ;;  %vm984_vm2 = vcmp.lt.f32.partialorder %v261_v39, 0.0004427343 }
  0x3c   :  { %666 = vlog2.f32 %v273_v46  ;;  %v590_v9 = vadd.f32 -0.6931472, %v477_v61  ;;  %v254_v13 = vsel %vm956_vm0, %v251_v50, %v248_v7  ;;  %v257_v14 = vmul.f32 0.6931472, %v663_v8  ;;  %v1028_v39 = vld [vmem:[#allocation2 + $0x98] sm:$0xff]  ;;  %v1042_v50 = vld [vmem:[#allocation2 + $0xa8] sm:$0xff] }
  0x3d   :  { %v147_v17 = vmul.f32 1.442695, %v101_v54  ;;  %540 = vst [vmem:[#allocation5 + $0x28] sm:$0xff] %v589_v53  ;;  %v478_v59 = vsel %vm62_vm14, %v846_v19, %v254_v13  ;;  %v270_v10 = vand.u32 2147483647, %v892_v22  ;;  %v282_v18 = vadd.f32 1.0, %v902_v35 }
  0x3e   :  { %v103_v21 = vmin.f32 %v979_v15, 20.0  ;;  %541 = vst [vmem:[#allocation5 + $0x30] sm:$0xff] %v590_v9  ;;  %v591_v60 = vadd.f32 -0.6931472, %v478_v59  ;;  %v263_v16 = vsel %vm984_vm2, %v260_v52, %v257_v14  ;;  %v269_v25 = vmul.f32 %v892_v22, %v268_v3  ;;  %v1010_v22 = vld [vmem:[#allocation2 + $0x88] sm:$0xff] }
  0x3f   :  { %vm65_vm3 = vcmp.gt.f32.partialorder %v853_v24, 20.0  ;;  %v277_v54 = vadd.f32 1.0, %v276_v11  ;;  %v479_v19 = vsel %vm63_vm15, %v848_v20, %v263_v16  ;;  %v279_v0 = vand.u32 2147483647, %v894_v29 }
  0x40   :  { %668 = vlog2.f32 %v282_v18  ;;  %v291_v26 = vadd.f32 1.0, %v905_v40  ;;  %542 = vst [vmem:[#allocation5 + $0x38] sm:$0xff] %v591_v60  ;;  %v592_v4 = vadd.f32 -0.6931472, %v479_v19  ;;  %v285_v63 = vmul.f32 -0.5, %v902_v35 }
  0x41   :  { %v288_v28 = vand.u32 2147483647, %v902_v35  ;;  %670 = vpow2.f32 %v872_v58  ;;  %v665_v31 = vpop.eup %664  ;;  %vm1012_vm4 = vcmp.lt.f32.partialorder %v270_v10, 0.0004427343  ;;  %v294_v20 = vmul.f32 -0.5, %v905_v40  ;;  %v1020_v58 = vld [vmem:[#allocation2 + $0x90] sm:$0xff] }
  0x42   :  { %672 = vlog2.f32 %v291_v26  ;;  %v149_v34 = vmul.f32 1.442695, %v102_v62  ;;  %543 = vst [vmem:[#allocation5 + $0x40] sm:$0xff] %v592_v4  ;;  %v266_v1 = vmul.f32 0.6931472, %v665_v31  ;;  %vm66_vm5 = vcmp.gt.f32.partialorder %v856_v27, 20.0 }
  0x43   :  { %674 = vpow2.f32 %v147_v17  ;;  %v151_v32 = vmul.f32 1.442695, %v103_v21  ;;  %v278_v36 = vmul.f32 %v894_v29, %v277_v54  ;;  %vm1023_vm6 = vcmp.lt.f32.partialorder %v279_v0, 0.0004427343 }
  0x44   :  { %676 = vpow2.f32 %v149_v34  ;;  %v104_v2 = vmin.f32 %v1010_v22, 20.0  ;;  %v272_v62 = vsel %vm1012_vm4, %v269_v25, %v266_v1  ;;  %v286_v44 = vadd.f32 1.0, %v285_v63 }
  0x45   :  { %vm1032_vm7 = vcmp.lt.f32.partialorder %v288_v28, 0.0004427343  ;;  %678 = vpow2.f32 %v151_v32  ;;  %v480_v43 = vsel %vm64_vm1, %v851_v23, %v272_v62  ;;  %v295_v48 = vadd.f32 1.0, %v294_v20 }
  0x46   :  { %v667_v29 = vpop.eup %666  ;;  %v153_v5 = vmul.f32 1.442695, %v104_v2  ;;  %v105_v49 = vmin.f32 %v1020_v58, 20.0  ;;  %v593_v52 = vadd.f32 -0.6931472, %v480_v43  ;;  %vm67_vm8 = vcmp.gt.f32.partialorder %v859_v30, 20.0 }
  0x47   :  { %v275_v56 = vmul.f32 0.6931472, %v667_v29  ;;  %v106_v57 = vmin.f32 %v1028_v39, 20.0  ;;  %v297_v55 = vand.u32 2147483647, %v905_v40  ;;  %v107_v46 = vmin.f32 %v1036_v41, 20.0 }
  0x48   :  { %680 = vpow2.f32 %v153_v5  ;;  %v155_v3 = vmul.f32 1.442695, %v105_v49  ;;  %544 = vst [vmem:[#allocation5 + $0x48] sm:$0xff] %v593_v52  ;;  %v287_v47 = vmul.f32 %v902_v35, %v286_v44  ;;  %v108_v7 = vmin.f32 %v1042_v50, 20.0 }
  0x49   :  { %v281_v23 = vsel %vm1023_vm6, %v278_v36, %v275_v56  ;;  %v157_v6 = vmul.f32 1.442695, %v106_v57  ;;  %v296_v53 = vmul.f32 %v905_v40, %v295_v48  ;;  %v159_v61 = vmul.f32 1.442695, %v107_v46 }
  0x4a   :  { %v669_v11 = vpop.eup %668  ;;  %v481_v8 = vsel %vm65_vm3, %v853_v24, %v281_v23  ;;  %682 = vpow2.f32 %v155_v3  ;;  %v161_v17 = vmul.f32 1.442695, %v108_v7  ;;  %vm1058_vm9 = vcmp.lt.f32.partialorder %v297_v55, 0.0004427343 }
  0x4b   :  { %v671_v9 = vpop.eup %670  ;;  %v594_v13 = vadd.f32 -0.6931472, %v481_v8  ;;  %v284_v14 = vmul.f32 0.6931472, %v669_v11  ;;  %684 = vpow2.f32 %v157_v6  ;;  %v109_v60 = vmin.f32 %v1056_v12, 20.0 }
  0x4c   :  { %v673_v35 = vpop.eup %672  ;;  %v300_v10 = vadd.f32 1.0, %v671_v9  ;;  %v303_v18 = vmul.f32 -0.5, %v671_v9  ;;  %686 = vpow2.f32 %v159_v61  ;;  %v306_v19 = vand.u32 2147483647, %v671_v9 }
  0x4d   :  { %v675_v24 = vpop.eup %674  ;;  %545 = vst [vmem:[#allocation5 + $0x50] sm:$0xff] %v594_v13  ;;  %v290_v40 = vsel %vm1032_vm7, %v287_v47, %v284_v14  ;;  %v293_v21 = vmul.f32 0.6931472, %v673_v35  ;;  %688 = vpow2.f32 %v161_v17  ;;  %vm68_vm10 = vcmp.gt.f32.partialorder %v864_v38, 20.0 }
  0x4e   :  { %v677_v16 = vpop.eup %676  ;;  %v482_v25 = vsel %vm66_vm5, %v856_v27, %v290_v40  ;;  %690 = vlog2.f32 %v300_v10  ;;  %v304_v54 = vadd.f32 1.0, %v303_v18  ;;  %v309_v63 = vadd.f32 1.0, %v675_v24  ;;  %v1181_v18 = vld [vmem:[#allocation2 + $0xd8] sm:$0xff] }
  0x4f   :  { %v679_v0 = vpop.eup %678  ;;  %v595_v26 = vadd.f32 -0.6931472, %v482_v25  ;;  %v299_v4 = vsel %vm1058_vm9, %v296_v53, %v293_v21  ;;  %v312_v28 = vmul.f32 -0.5, %v675_v24  ;;  %v315_v33 = vand.u32 2147483647, %v675_v24  ;;  %v1187_v25 = vld [vmem:[#allocation2 + $0xe0] sm:$0xff] }
  0x50   :  { %v483_v31 = vsel %vm67_vm8, %v859_v30, %v299_v4  ;;  %v318_v20 = vadd.f32 1.0, %v677_v16  ;;  %692 = vlog2.f32 %v309_v63  ;;  %v321_v1 = vmul.f32 -0.5, %v677_v16 }
  0x51   :  { %546 = vst [vmem:[#allocation5 + $0x58] sm:$0xff] %v595_v26  ;;  %v596_v34 = vadd.f32 -0.6931472, %v483_v31  ;;  %v313_v27 = vadd.f32 1.0, %v312_v28  ;;  %vm1074_vm11 = vcmp.lt.f32.partialorder %v306_v19, 0.0004427343  ;;  %v305_v30 = vmul.f32 %v671_v9, %v304_v54 }
  0x52   :  { %v681_v32 = vpop.eup %680  ;;  %694 = vlog2.f32 %v318_v20  ;;  %v327_v37 = vadd.f32 1.0, %v679_v0  ;;  %v1078_v2 = vmul.f32 1.442695, %v109_v60  ;;  %v322_v62 = vadd.f32 1.0, %v321_v1 }
  0x53   :  { %547 = vst [vmem:[#allocation5 + $0x60] sm:$0xff] %v596_v34  ;;  %v324_v44 = vand.u32 2147483647, %v677_v16  ;;  %v330_v45 = vmul.f32 -0.5, %v679_v0  ;;  %vm69_vm12 = vcmp.gt.f32.partialorder %v867_v42, 20.0  ;;  %v336_v48 = vadd.f32 1.0, %v681_v32 }
  0x54   :  { %v683_v29 = vpop.eup %682  ;;  %696 = vlog2.f32 %v327_v37  ;;  %v333_v43 = vand.u32 2147483647, %v679_v0  ;;  %v339_v5 = vmul.f32 -0.5, %v681_v32  ;;  %v314_v52 = vmul.f32 %v675_v24, %v313_v27 }
  0x55   :  { %v1081_v49 = vpop.eup %684  ;;  %vm1083_vm13 = vcmp.lt.f32.partialorder %v315_v33, 0.0004427343  ;;  %vm70_vm14 = vcmp.gt.f32.partialorder %v869_v51, 20.0  ;;  %v331_v57 = vadd.f32 1.0, %v330_v45  ;;  %v342_v55 = vand.u32 2147483647, %v681_v32 }
  0x56   :  { %v1088_v3 = vpop.eup %686  ;;  %698 = vlog2.f32 %v336_v48  ;;  %v340_v46 = vadd.f32 1.0, %v339_v5  ;;  %v345_v23 = vadd.f32 1.0, %v683_v29  ;;  %v348_v47 = vmul.f32 -0.5, %v683_v29 }
  0x57   :  { %v1090_v6 = vpop.eup %688  ;;  %v323_v7 = vmul.f32 %v677_v16, %v322_v62  ;;  %vm1092_vm15 = vcmp.lt.f32.partialorder %v324_v44, 0.0004427343  ;;  %vm71_vm0 = vcmp.gt.f32.partialorder %v979_v15, 20.0  ;;  %v351_v8 = vand.u32 2147483647, %v683_v29 }
  0x58   :  { %v354_v53 = vadd.f32 1.0, %v1081_v49  ;;  %v691_v61 = vpop.eup %690  ;;  %vm1098_vm1 = vcmp.lt.f32.partialorder %v333_v43, 0.0004427343  ;;  %700 = vlog2.f32 %v345_v23  ;;  %v349_v13 = vadd.f32 1.0, %v348_v47 }
  0x59   :  { %v357_v14 = vmul.f32 -0.5, %v1081_v49  ;;  %v302_v17 = vmul.f32 0.6931472, %v691_v61  ;;  %v332_v35 = vmul.f32 %v679_v0, %v331_v57  ;;  %vm72_vm2 = vcmp.gt.f32.partialorder %v1010_v22, 20.0 }
  0x5a   :  { %702 = vlog2.f32 %v354_v53  ;;  %v360_v59 = vand.u32 2147483647, %v1081_v49  ;;  %v341_v10 = vmul.f32 %v681_v32, %v340_v46  ;;  %vm1105_vm3 = vcmp.lt.f32.partialorder %v342_v55, 0.0004427343  ;;  %v693_v21 = vpop.eup %692  ;;  %v1158_v46 = vld [vmem:[#allocation2 + $0xc8] sm:$0xff] }
  0x5b   :  { %v363_v24 = vadd.f32 1.0, %v1088_v3  ;;  %v366_v40 = vmul.f32 -0.5, %v1088_v3  ;;  %v308_v60 = vsel %vm1074_vm11, %v305_v30, %v302_v17  ;;  %vm73_vm4 = vcmp.gt.f32.partialorder %v1020_v58, 20.0  ;;  %v1138_v30 = vld [vmem:[#allocation2 + $0xb8] sm:$0xff] }
  0x5c   :  { %v350_v16 = vmul.f32 %v683_v29, %v349_v13  ;;  %vm1114_vm5 = vcmp.lt.f32.partialorder %v351_v8, 0.0004427343  ;;  %v372_v54 = vadd.f32 1.0, %v1090_v6  ;;  %v695_v19 = vpop.eup %694  ;;  %v484_v0 = vsel %vm68_vm10, %v864_v38, %v308_v60 }
  0x5d   :  { %v311_v26 = vmul.f32 0.6931472, %v693_v21  ;;  %vm74_vm6 = vcmp.gt.f32.partialorder %v1028_v39, 20.0  ;;  %v358_v4 = vadd.f32 1.0, %v357_v14  ;;  %704 = vlog2.f32 %v363_v24 }
  0x5e   :  { %v597_v63 = vadd.f32 -0.6931472, %v484_v0  ;;  %v320_v28 = vmul.f32 0.6931472, %v695_v19  ;;  %vm1123_vm7 = vcmp.lt.f32.partialorder %v360_v59, 0.0004427343  ;;  %706 = vlog2.f32 %v372_v54  ;;  %v697_v33 = vpop.eup %696 }
  0x5f   :  { %v317_v20 = vsel %vm1083_vm13, %v314_v52, %v311_v26  ;;  %v367_v34 = vadd.f32 1.0, %v366_v40  ;;  %v369_v27 = vand.u32 2147483647, %v1088_v3  ;;  %v375_v38 = vmul.f32 -0.5, %v1090_v6  ;;  %v1147_v52 = vld [vmem:[#allocation2 + $0xc0] sm:$0xff] }
  0x60   :  { %548 = vst [vmem:[#allocation5 + $0x68] sm:$0xff] %v597_v63  ;;  %v485_v1 = vsel %vm69_vm12, %v867_v42, %v317_v20  ;;  %v326_v32 = vsel %vm1092_vm15, %v323_v7, %v320_v28  ;;  %v329_v36 = vmul.f32 0.6931472, %v697_v33  ;;  %vm75_vm8 = vcmp.gt.f32.partialorder %v1036_v41, 20.0  ;;  %v699_v62 = vpop.eup %698  ;;  %v1200_v20 = vld [vmem:[#allocation2 + $0xe8] sm:$0xff] }
  0x61   :  { %v378_v37 = vand.u32 2147483647, %v1090_v6  ;;  %v598_v44 = vadd.f32 -0.6931472, %v485_v1  ;;  %v486_v45 = vsel %vm70_vm14, %v869_v51, %v326_v32  ;;  %v359_v29 = vmul.f32 %v1081_v49, %v358_v4 }
  0x62   :  { %v376_v43 = vadd.f32 1.0, %v375_v38  ;;  %v599_v42 = vadd.f32 -0.6931472, %v486_v45  ;;  %v335_v48 = vsel %vm1098_vm1, %v332_v35, %v329_v36  ;;  %v338_v5 = vmul.f32 0.6931472, %v699_v62  ;;  %v701_v56 = vpop.eup %700  ;;  %v1202_v38 = vld [vmem:[#allocation2 + $0xf0] sm:$0xff] }
  0x63   :  { %708 = vpow2.f32 %v1078_v2  ;;  %549 = vst [vmem:[#allocation5 + $0x70] sm:$0xff] %v598_v44  ;;  %v487_v57 = vsel %vm71_vm0, %v979_v15, %v335_v48  ;;  %v368_v51 = vmul.f32 %v1088_v3, %v367_v34  ;;  %vm1153_vm9 = vcmp.lt.f32.partialorder %v369_v27, 0.0004427343  ;;  %v1205_v36 = vld [vmem:[#allocation2 + $0xf8] sm:$0xff] }
  0x64   :  { %v110_v55 = vmin.f32 %v1138_v30, 20.0  ;;  %v703_v23 = vpop.eup %702  ;;  %550 = vst [vmem:[#allocation5 + $0x78] sm:$0xff] %v599_v42  ;;  %v600_v2 = vadd.f32 -0.6931472, %v487_v57  ;;  %v344_v47 = vsel %vm1105_vm3, %v341_v10, %v338_v5  ;;  %v347_v7 = vmul.f32 0.6931472, %v701_v56 }
  0x65   :  { %vm1162_vm10 = vcmp.lt.f32.partialorder %v378_v37, 0.0004427343  ;;  %v488_v15 = vsel %vm72_vm2, %v1010_v22, %v344_v47  ;;  %v356_v3 = vmul.f32 0.6931472, %v703_v23  ;;  %v111_v53 = vmin.f32 %v1147_v52, 20.0  ;;  %v1179_v10 = vld [vmem:[#allocation2 + $0xd0] sm:$0xff] }
  0x66   :  { %v165_v8 = vmul.f32 1.442695, %v110_v55  ;;  %551 = vst [vmem:[#allocation5 + $0x80] sm:$0xff] %v600_v2  ;;  %v601_v61 = vadd.f32 -0.6931472, %v488_v15  ;;  %v353_v9 = vsel %vm1114_vm5, %v350_v16, %v347_v7  ;;  %v377_v13 = vmul.f32 %v1090_v6, %v376_v43 }
  0x67   :  { %v112_v14 = vmin.f32 %v1158_v46, 20.0  ;;  %v705_v17 = vpop.eup %704  ;;  %v489_v35 = vsel %vm73_vm4, %v1020_v58, %v353_v9  ;;  %v362_v22 = vsel %vm1123_vm7, %v359_v29, %v356_v3  ;;  %v167_v59 = vmul.f32 1.442695, %v111_v53 }
  0x68   :  { %710 = vpow2.f32 %v165_v8  ;;  %v707_v24 = vpop.eup %706  ;;  %552 = vst [vmem:[#allocation5 + $0x88] sm:$0xff] %v601_v61  ;;  %v602_v40 = vadd.f32 -0.6931472, %v489_v35  ;;  %v490_v6 = vsel %vm74_vm6, %v1028_v39, %v362_v22  ;;  %v365_v21 = vmul.f32 0.6931472, %v705_v17 }
  0x69   :  { %v169_v60 = vmul.f32 1.442695, %v112_v14  ;;  %v603_v16 = vadd.f32 -0.6931472, %v490_v6  ;;  %vm76_vm11 = vcmp.gt.f32.partialorder %v1042_v50, 20.0  ;;  %712 = vpow2.f32 %v167_v59 }
  0x6a   :  { %v374_v58 = vmul.f32 0.6931472, %v707_v24  ;;  %553 = vst [vmem:[#allocation5 + $0x90] sm:$0xff] %v602_v40  ;;  %v371_v54 = vsel %vm1153_vm9, %v368_v51, %v365_v21  ;;  %v113_v19 = vmin.f32 %v1179_v10, 20.0  ;;  %v114_v26 = vmin.f32 %v1181_v18, 20.0 }
  0x6b   :  { %714 = vpow2.f32 %v169_v60  ;;  %554 = vst [vmem:[#allocation5 + $0x98] sm:$0xff] %v603_v16  ;;  %v491_v39 = vsel %vm75_vm8, %v1036_v41, %v371_v54  ;;  %v115_v33 = vmin.f32 %v1187_v25, 20.0  ;;  %v116_v32 = vmin.f32 %v1200_v20, 20.0 }
  0x6c   :  { %v380_v0 = vsel %vm1162_vm10, %v377_v13, %v374_v58  ;;  %v604_v63 = vadd.f32 -0.6931472, %v491_v39  ;;  %v171_v31 = vmul.f32 1.442695, %v113_v19  ;;  %v173_v41 = vmul.f32 1.442695, %v114_v26 }
  0x6d   :  { %v709_v4 = vpop.eup %708  ;;  %v492_v28 = vsel %vm76_vm11, %v1042_v50, %v380_v0  ;;  %v175_v1 = vmul.f32 1.442695, %v115_v33  ;;  %v117_v37 = vmin.f32 %v1202_v38, 20.0  ;;  %v177_v44 = vmul.f32 1.442695, %v116_v32 }
  0x6e   :  { %v605_v34 = vadd.f32 -0.6931472, %v492_v28  ;;  %v381_v27 = vadd.f32 1.0, %v709_v4  ;;  %555 = vst [vmem:[#allocation5 + $0xa0] sm:$0xff] %v604_v63  ;;  %716 = vpow2.f32 %v171_v31  ;;  %v384_v50 = vmul.f32 -0.5, %v709_v4 }
  0x6f   :  { %v118_v29 = vmin.f32 %v1205_v36, 20.0  ;;  %v387_v42 = vand.u32 2147483647, %v709_v4  ;;  %v179_v57 = vmul.f32 1.442695, %v117_v37  ;;  %vm77_vm12 = vcmp.gt.f32.partialorder %v1056_v12, 20.0 }
  0x70   :  { %556 = vst [vmem:[#allocation5 + $0xa8] sm:$0xff] %v605_v34  ;;  %718 = vlog2.f32 %v381_v27  ;;  %v385_v5 = vadd.f32 1.0, %v384_v50  ;;  %vm78_vm14 = vcmp.gt.f32.partialorder %v1138_v30, 20.0  ;;  %vm79_vm15 = vcmp.gt.f32.partialorder %v1147_v52, 20.0 }
  0x71   :  { %720 = vpow2.f32 %v173_v41  ;;  %v181_v55 = vmul.f32 1.442695, %v118_v29  ;;  %vm1210_vm13 = vcmp.lt.f32.partialorder %v387_v42, 0.0004427343  ;;  %vm80_vm0 = vcmp.gt.f32.partialorder %v1158_v46, 20.0 }
  0x72   :  { %v711_v62 = vpop.eup %710  ;;  %722 = vpow2.f32 %v175_v1  ;;  %v386_v7 = vmul.f32 %v709_v4, %v385_v5  ;;  %vm81_vm3 = vcmp.gt.f32.partialorder %v1179_v10, 20.0  ;;  %vm82_vm6 = vcmp.gt.f32.partialorder %v1181_v18, 20.0 }
  0x73   :  { %v390_v45 = vadd.f32 1.0, %v711_v62  ;;  %v713_v43 = vpop.eup %712  ;;  %724 = vpow2.f32 %v177_v44  ;;  %v393_v51 = vmul.f32 -0.5, %v711_v62  ;;  %v396_v8 = vand.u32 2147483647, %v711_v62 }
  0x74   :  { %v399_v56 = vadd.f32 1.0, %v713_v43  ;;  %v402_v23 = vmul.f32 -0.5, %v713_v43  ;;  %v405_v53 = vand.u32 2147483647, %v713_v43  ;;  %vm83_vm9 = vcmp.gt.f32.partialorder %v1187_v25, 20.0 }
  0x75   :  { %v715_v48 = vpop.eup %714  ;;  %726 = vlog2.f32 %v390_v45  ;;  %v394_v3 = vadd.f32 1.0, %v393_v51  ;;  %vm1231_vm1 = vcmp.lt.f32.partialorder %v396_v8, 0.0004427343  ;;  %vm84_vm11 = vcmp.gt.f32.partialorder %v1200_v20, 20.0 }
  0x76   :  { %v408_v49 = vadd.f32 1.0, %v715_v48  ;;  %728 = vlog2.f32 %v399_v56  ;;  %v411_v2 = vmul.f32 -0.5, %v715_v48  ;;  %v414_v14 = vand.u32 2147483647, %v715_v48 }
  0x77   :  { %v403_v22 = vadd.f32 1.0, %v402_v23  ;;  %v395_v54 = vmul.f32 %v711_v62, %v394_v3  ;;  %vm1235_vm2 = vcmp.lt.f32.partialorder %v405_v53, 0.0004427343 }
  0x78   :  { %730 = vlog2.f32 %v408_v49  ;;  %v717_v47 = vpop.eup %716  ;;  %v412_v59 = vadd.f32 1.0, %v411_v2  ;;  %vm1242_vm4 = vcmp.lt.f32.partialorder %v414_v14, 0.0004427343 }
  0x79   :  { %732 = vpow2.f32 %v179_v57  ;;  %v417_v61 = vadd.f32 1.0, %v717_v47  ;;  %v420_v17 = vmul.f32 -0.5, %v717_v47  ;;  %v423_v6 = vand.u32 2147483647, %v717_v47 }
  0x7a   :  { %v719_v15 = vpop.eup %718  ;;  %734 = vpow2.f32 %v181_v55  ;;  %v404_v28 = vmul.f32 %v713_v43, %v403_v22  ;;  %v413_v34 = vmul.f32 %v715_v48, %v412_v59 }
  0x7b   :  { %v1216_v9 = vpop.eup %720  ;;  %v383_v13 = vmul.f32 0.6931472, %v719_v15  ;;  %736 = vlog2.f32 %v417_v61  ;;  %v421_v4 = vadd.f32 1.0, %v420_v17  ;;  %vm1246_vm5 = vcmp.lt.f32.partialorder %v423_v6, 0.0004427343 }
  0x7c   :  { %v1219_v35 = vpop.eup %722  ;;  %v426_v24 = vadd.f32 1.0, %v1216_v9  ;;  %v429_v21 = vmul.f32 -0.5, %v1216_v9  ;;  %v432_v42 = vand.u32 2147483647, %v1216_v9 }
  0x7d   :  { %v389_v40 = vsel %vm1210_vm13, %v386_v7, %v383_v13  ;;  %v435_v60 = vadd.f32 1.0, %v1219_v35  ;;  %v1226_v16 = vpop.eup %724  ;;  %v422_v43 = vmul.f32 %v717_v47, %v421_v4  ;;  %v441_v23 = vand.u32 2147483647, %v1219_v35 }
  0x7e   :  { %v493_v58 = vsel %vm77_vm12, %v1056_v12, %v389_v40  ;;  %738 = vlog2.f32 %v426_v24  ;;  %v438_v12 = vmul.f32 -0.5, %v1219_v35  ;;  %v444_v31 = vadd.f32 1.0, %v1226_v16 }
  0x7f   :  { %v727_v39 = vpop.eup %726  ;;  %v606_v0 = vadd.f32 -0.6931472, %v493_v58  ;;  %740 = vlog2.f32 %v435_v60  ;;  %v430_v1 = vadd.f32 1.0, %v429_v21  ;;  %v447_v62 = vmul.f32 -0.5, %v1226_v16 }
  0x80   :  { %v392_v63 = vmul.f32 0.6931472, %v727_v39  ;;  %v729_v33 = vpop.eup %728  ;;  %742 = vlog2.f32 %v444_v31  ;;  %v439_v56 = vadd.f32 1.0, %v438_v12  ;;  %vm1277_vm7 = vcmp.lt.f32.partialorder %v432_v42, 0.0004427343 }
  0x81   :  { %557 = vst [vmem:[#allocation5 + $0xb0] sm:$0xff] %v606_v0  ;;  %v401_v37 = vmul.f32 0.6931472, %v729_v33  ;;  %v431_v55 = vmul.f32 %v1216_v9, %v430_v1  ;;  %v448_v11 = vadd.f32 1.0, %v447_v62  ;;  %vm1285_vm8 = vcmp.lt.f32.partialorder %v441_v23, 0.0004427343 }
  0x82   :  { %v731_v32 = vpop.eup %730  ;;  %v398_v50 = vsel %vm1231_vm1, %v395_v54, %v392_v63  ;;  %v440_v9 = vmul.f32 %v1219_v35, %v439_v56  ;;  %vm85_vm13 = vcmp.gt.f32.partialorder %v1202_v38, 20.0 }
  0x83   :  { %v1253_v44 = vpop.eup %732  ;;  %v494_v45 = vsel %vm78_vm14, %v1138_v30, %v398_v50  ;;  %v410_v29 = vmul.f32 0.6931472, %v731_v32  ;;  %v407_v5 = vsel %vm1235_vm2, %v404_v28, %v401_v37  ;;  %v449_v21 = vmul.f32 %v1226_v16, %v448_v11 }
  0x84   :  { %v607_v48 = vadd.f32 -0.6931472, %v494_v45  ;;  %v453_v57 = vadd.f32 1.0, %v1253_v44  ;;  %v1262_v51 = vpop.eup %734  ;;  %v495_v49 = vsel %vm79_vm15, %v1147_v52, %v407_v5  ;;  %v456_v52 = vmul.f32 -0.5, %v1253_v44 }
  0x85   :  { %v416_v30 = vsel %vm1242_vm4, %v413_v34, %v410_v29  ;;  %v737_v2 = vpop.eup %736  ;;  %v608_v47 = vadd.f32 -0.6931472, %v495_v49  ;;  %v462_v8 = vadd.f32 1.0, %v1262_v51  ;;  %v465_v24 = vmul.f32 -0.5, %v1262_v51 }
  0x86   :  { %558 = vst [vmem:[#allocation5 + $0xb8] sm:$0xff] %v607_v48  ;;  %v496_v7 = vsel %vm80_vm0, %v1158_v46, %v416_v30  ;;  %744 = vlog2.f32 %v453_v57  ;;  %v419_v3 = vmul.f32 0.6931472, %v737_v2  ;;  %v450_v46 = vand.u32 2147483647, %v1226_v16 }
  0x87   :  { %v609_v15 = vadd.f32 -0.6931472, %v496_v7  ;;  %559 = vst [vmem:[#allocation5 + $0xc0] sm:$0xff] %v608_v47  ;;  %746 = vlog2.f32 %v462_v8  ;;  %v457_v60 = vadd.f32 1.0, %v456_v52  ;;  %v459_v39 = vand.u32 2147483647, %v1253_v44 }
  0x88   :  { %v739_v53 = vpop.eup %738  ;;  %v425_v14 = vsel %vm1246_vm5, %v422_v43, %v419_v3  ;;  %vm1302_vm10 = vcmp.lt.f32.partialorder %v450_v46, 0.0004427343  ;;  %v466_v63 = vadd.f32 1.0, %v465_v24  ;;  %v468_v12 = vand.u32 2147483647, %v1262_v51 }
  0x89   :  { %v741_v13 = vpop.eup %740  ;;  %560 = vst [vmem:[#allocation5 + $0xc8] sm:$0xff] %v609_v15  ;;  %v428_v17 = vmul.f32 0.6931472, %v739_v53  ;;  %v497_v59 = vsel %vm81_vm3, %v1179_v10, %v425_v14  ;;  %v458_v28 = vmul.f32 %v1253_v44, %v457_v60  ;;  %vm460_vm12 = vcmp.lt.f32.partialorder %v459_v39, 0.0004427343 }
  0x8a   :  { %v437_v35 = vmul.f32 0.6931472, %v741_v13  ;;  %v610_v40 = vadd.f32 -0.6931472, %v497_v59  ;;  %v743_v58 = vpop.eup %742  ;;  %v467_v27 = vmul.f32 %v1262_v51, %v466_v63  ;;  %vm469_vm14 = vcmp.lt.f32.partialorder %v468_v12, 0.0004427343 }
  0x8b   :  { %v434_v6 = vsel %vm1277_vm7, %v431_v55, %v428_v17  ;;  %v446_v16 = vmul.f32 0.6931472, %v743_v58  ;;  %vm86_vm15 = vcmp.gt.f32.partialorder %v1205_v36, 20.0 }
  0x8c   :  { %v498_v54 = vsel %vm82_vm6, %v1181_v18, %v434_v6  ;;  %v443_v10 = vsel %vm1285_vm8, %v440_v9, %v437_v35  ;;  %561 = vst [vmem:[#allocation5 + $0xd0] sm:$0xff] %v610_v40 }
  0x8d   :  { %v611_v0 = vadd.f32 -0.6931472, %v498_v54  ;;  %v499_v26 = vsel %vm83_vm9, %v1187_v25, %v443_v10  ;;  %v452_v18 = vsel %vm1302_vm10, %v449_v21, %v446_v16 }
  0x8e   :  { %v612_v4 = vadd.f32 -0.6931472, %v499_v26  ;;  %v500_v33 = vsel %vm84_vm11, %v1200_v20, %v452_v18 }
  0x8f   :  { %562 = vst [vmem:[#allocation5 + $0xd8] sm:$0xff] %v611_v0  ;;  %v613_v34 = vadd.f32 -0.6931472, %v500_v33 }
  0x90   :  { %v745_v31 = vpop.eup %744  ;;  %563 = vst [vmem:[#allocation5 + $0xe0] sm:$0xff] %v612_v4 }
  0x91   :  { %v455_v25 = vmul.f32 0.6931472, %v745_v31  ;;  %v747_v41 = vpop.eup %746  ;;  %564 = vst [vmem:[#allocation5 + $0xe8] sm:$0xff] %v613_v34 }
  0x92   :  { %v464_v50 = vmul.f32 0.6931472, %v747_v41 }
  0x93   :  { %v461_v1 = vsel %vm460_vm12, %v458_v28, %v455_v25 }
  0x94   :  { %v501_v32 = vsel %vm85_vm13, %v1202_v38, %v461_v1  ;;  %v470_v20 = vsel %vm469_vm14, %v467_v27, %v464_v50 }
  0x95   :  { %v614_v37 = vadd.f32 -0.6931472, %v501_v32  ;;  %v502_v62 = vsel %vm86_vm15, %v1205_v36, %v470_v20 }
  0x96   :  { %v615_v44 = vadd.f32 -0.6931472, %v502_v62 }
  0x97   :  { %565 = vst [vmem:[#allocation5 + $0xf0] sm:$0xff] %v614_v37 }
  0x98   :  { %566 = vst [vmem:[#allocation5 + $0xf8] sm:$0xff] %v615_v44 }
  0x99   :  { %781 = shalt.err (!%p778_p12)
}
  0x9a   :  { %s782_s24 = scalar_lea.hbm %s1335_s1, 4096 }
  0x9b   :  { %p783_p13 = scmp.ne.s32.totalorder %s1335_s1, %s782_s24  ;;  %p786_p0 = scmp.lt.u32.totalorder %s782_s24, %s1335_s1 }
  0x9d   :  { %p788_p1 = pnand %p786_p0, %p783_p13 }
  0x9f   :  { %791 = shalt.err (!%p788_p1)
}
  0xa0   :  { %578 = dma.vmem_to_hbm [thread:$0]  %s573_s20, 4096, %s1335_s1, [#allocation4], %s797_s16, %s797_s16, %s798_s17  }
  0xa1   :  { %794 = dma.done.wait [#allocation4], 4096  }
  0xa2   :  { %795 = vsyncadd [#allocation4], 4294963200 }
  0xa3   :  { %582 = vsyncpa [#allocation3], 1 }
  0xa4   :  { %583 = vsyncpa [#allocation4], 1 }

</bundles_post_ra>
